<compile_context>
chip_gen: v6e
topology: v6e:2x2x1
jax: 0.10.0
libtpu: 0.0.40
codegen_flags: <defaults>
</compile_context>

<pallas_src>
import functools

import jax
import jax.numpy as jnp
from jax.experimental import pallas as pl
from jax.experimental.pallas import tpu as pltpu


def _gat_fused_kernel(x_ref, w_ref, b_ref, a1_ref, a2_ref, ab_ref, o_ref, *,
                      batch, num_nodes, num_heads, f_out):
    """All heads + all batch elements in one grid-less invocation.

    Ref shapes:
      x_ref : (B, N, F_in)      VMEM
      w_ref : (F_in, H*F_out)   VMEM  -- W[i].weight.T packed head-major along lanes
      b_ref : (1, H*F_out)      VMEM  -- W[i].bias packed head-major
      a1_ref: (H*F_out, H)      VMEM  -- block matrix: col hd holds a1_hd in rows hd*Fo:(hd+1)*Fo
      a2_ref: (H, H*F_out)      VMEM  -- block matrix: row hd holds a2_hd in cols hd*Fo:(hd+1)*Fo
      ab_ref: (H,)              SMEM  -- a[i].bias (scalars)
      o_ref : (B, N, H*F_out)   VMEM  -- final concatenated layout
    """
    B, N, H, Fo = batch, num_nodes, num_heads, f_out

    for b in range(B):                 # B is tiny & static (=1) -> unrolled
        xb = x_ref[b]                                              # (N, F_in)

        # One fused projection for every head:
        #   (N, F_in) @ (F_in, H*F_out) -> (N, H*F_out)
        h_all = jnp.dot(xb, w_ref[...],
                        preferred_element_type=jnp.float32) + b_ref[...]

        # Two block-structured matmuls give every head's attention logits at once.
        #   s1_all[i, hd] = h_i^(hd) . a1_hd     (N, H)
        #   s2_all[hd, j] = h_j^(hd) . a2_hd     (H, N)
        s1_all = jnp.dot(h_all, a1_ref[...],
                         preferred_element_type=jnp.float32)       # (N, H)
        s2_all = jax.lax.dot_general(a2_ref[...], h_all,
                                     (((1,), (1,)), ((), ())),
                                     preferred_element_type=jnp.float32)  # (H, N)

        for hd in range(H):            # H is tiny & static (=4) -> unrolled
            # e[i, j] = tanh(h_i . a1 + h_j . a2 + b_a)
            e = jnp.tanh(s1_all[:, hd:hd + 1] + s2_all[hd:hd + 1, :] + ab_ref[hd])

            # softmax over j (dim=2 in the PyTorch code).  tanh output is bounded in
            # [-1, 1] so the max-subtraction is unnecessary; normalization uses an
            # exact f32 divide (approx reciprocal broke the 1e-3 tolerance).
            p = jnp.exp(e)                                         # (N, N)
            att = p / jnp.sum(p, axis=-1, keepdims=True)

            # dropout == identity (eval mode)
            h_hd = h_all[:, hd * Fo:(hd + 1) * Fo]                 # (N, F_out)
            o_ref[b, :, hd * Fo:(hd + 1) * Fo] = jnp.dot(
                att, h_hd, preferred_element_type=jnp.float32)


def pack_gat_params(params):
    """Pack per-head weights ONCE at parameter-load time (hoisted out of the forward).

    params: (W_t, b_W, a_W, a_b) stacked per head, torch-Linear layout.
    """
    W_t, b_W, a_W, a_b = params
    H, F_in, F_out = W_t.shape
    HFo = H * F_out

    W_all = jnp.transpose(W_t, (1, 0, 2)).reshape(F_in, HFo)      # (F_in, H*F_out)
    b_all = b_W.reshape(1, HFo)                                   # (1, H*F_out)
    a1 = a_W[:, 0, :F_out]                                        # (H, F_out)
    a2 = a_W[:, 0, F_out:]                                        # (H, F_out)
    ab = a_b[:, 0, 0]                                             # (H,)

    A1_blk = jnp.zeros((HFo, H), jnp.float32)
    A2_blk = jnp.zeros((H, HFo), jnp.float32)
    for hd in range(H):
        A1_blk = A1_blk.at[hd * F_out:(hd + 1) * F_out, hd].set(a1[hd])
        A2_blk = A2_blk.at[hd, hd * F_out:(hd + 1) * F_out].set(a2[hd])
    return W_all, b_all, A1_blk, A2_blk, ab


def gat_layer(node_embed, connection_info, packed_params):
    """Pallas implementation of GATLayer.forward (eval mode).

    node_embed     : (B, N, F_in) float32
    connection_info: unused by the reference forward pass (kept for signature parity)
    packed_params  : output of pack_gat_params
    returns        : (B, N, num_heads * F_out) float32
    """
    del connection_info  # not used by the PyTorch forward either
    W_all, b_all, A1_blk, A2_blk, ab = packed_params
    B, N, F_in = node_embed.shape
    HFo = W_all.shape[1]
    H = ab.shape[0]
    F_out = HFo // H

    kernel = functools.partial(_gat_fused_kernel, batch=B, num_nodes=N,
                               num_heads=H, f_out=F_out)
    vmem = pl.BlockSpec(memory_space=pltpu.MemorySpace.VMEM)
    smem = pl.BlockSpec(memory_space=pltpu.MemorySpace.SMEM)

    flops = (2 * B * N * F_in * HFo          # projection
             + 2 * B * N * HFo * H           # s1_all
             + 2 * B * H * HFo * N           # s2_all
             + 2 * B * H * N * N * F_out)    # att @ h
    transcendentals = 2 * B * H * N * N      # tanh + exp
    bytes_accessed = 4 * (B * N * F_in + F_in * HFo + HFo + HFo * H + H * HFo + H
                          + B * N * HFo)

    return pl.pallas_call(
        kernel,
        out_shape=jax.ShapeDtypeStruct((B, N, HFo), jnp.float32),
        in_specs=[vmem, vmem, vmem, vmem, vmem, smem],
        out_specs=vmem,
        cost_estimate=pl.CostEstimate(flops=flops,
                                      transcendentals=transcendentals,
                                      bytes_accessed=bytes_accessed),
    )(node_embed, W_all, b_all, A1_blk, A2_blk, ab)


def init_params(key, in_features, out_features, num_heads):
    """Deterministic PyTorch-Linear-style init (uniform +-1/sqrt(fan_in))."""
    kw, kbw, ka, kba = jax.random.split(key, 4)
    lim_w = 1.0 / jnp.sqrt(jnp.float32(in_features))
    lim_a = 1.0 / jnp.sqrt(jnp.float32(2 * out_features))
    # W[i].weight is (out, in) in torch; store transposed as (H, in, out)
    W_t = jax.random.uniform(kw, (num_heads, in_features, out_features),
                             jnp.float32, -lim_w, lim_w)
    b_W = jax.random.uniform(kbw, (num_heads, 1, out_features),
                             jnp.float32, -lim_w, lim_w)
    a_W = jax.random.uniform(ka, (num_heads, 1, 2 * out_features),
                             jnp.float32, -lim_a, lim_a)
    a_b = jax.random.uniform(kba, (num_heads, 1, 1),
                             jnp.float32, -lim_a, lim_a)
    return W_t, b_W, a_W, a_b


def gat_reference(node_embed, params):
    """Pure-JAX reference mirroring the PyTorch forward (eval mode)."""
    W_t, b_W, a_W, a_b = params
    H = W_t.shape[0]
    F_out = W_t.shape[2]
    outs = []
    for i in range(H):
        h = node_embed @ W_t[i] + b_W[i, 0]                      # (B,N,Fo)
        a1 = a_W[i, 0, :F_out]
        a2 = a_W[i, 0, F_out:]
        s1 = h @ a1[:, None]                                     # (B,N,1)
        s2 = jnp.swapaxes(h @ a2[:, None], 1, 2)                 # (B,1,N)
        e = jnp.tanh(s1 + s2 + a_b[i, 0, 0])                     # (B,N,N)
        att = jax.nn.softmax(e, axis=2)
        outs.append(att @ h)
    return jnp.concatenate(outs, axis=-1)


if __name__ == "__main__":
    embedding_dim = 16
    num_nodes = 10
    num_heads = 4

    key = jax.random.PRNGKey(0)
    k_node, k_conn, k_edge, k_param = jax.random.split(key, 4)

    node_embed = jax.random.normal(k_node, (1, num_nodes, embedding_dim), jnp.float32)
    connection_info = jax.random.randint(
        k_conn, (1, num_nodes, num_nodes, embedding_dim), 0, 2).astype(jnp.float32)
    edge_embed = jax.random.normal(
        k_edge, (1, num_nodes, num_nodes, embedding_dim), jnp.float32)

    params = init_params(k_param, embedding_dim, embedding_dim, num_heads)
    packed = pack_gat_params(params)      # done once, outside the forward pass

    out = gat_layer(node_embed, connection_info * edge_embed, packed)
    out = jax.block_until_ready(out)

    ref = gat_reference(node_embed, params)
    assert out.shape == (1, num_nodes, num_heads * embedding_dim), out.shape
    assert jnp.allclose(out, ref, atol=1e-3, rtol=1e-3), float(jnp.max(jnp.abs(out - ref)))

    print("KERNEL_OK")
</pallas_src>

<mosaic_0001>
module attributes {stable_mosaic.version = 11 : i64} {
  func.func @_gat_fused_kernel(%arg0: memref<1x10x16xf32, #tpu.memory_space<vmem>>, %arg1: memref<16x64xf32, #tpu.memory_space<vmem>>, %arg2: memref<1x64xf32, #tpu.memory_space<vmem>>, %arg3: memref<64x4xf32, #tpu.memory_space<vmem>>, %arg4: memref<4x64xf32, #tpu.memory_space<vmem>>, %arg5: memref<4xf32, #tpu.memory_space<smem>>, %arg6: memref<1x10x64xf32, #tpu.memory_space<vmem>>) attributes {dimension_semantics = [], scalar_prefetch = 0 : i64, scratch_operands = 0 : i64, tpu.core_type = #tpu.core_type<tc>} {
    %c0 = arith.constant 0 : index
    %c0_0 = arith.constant 0 : index
    %c0_1 = arith.constant 0 : index
    %0 = vector.load %arg0[%c0, %c0_0, %c0_1] : memref<1x10x16xf32, #tpu.memory_space<vmem>>, vector<1x10x16xf32>
    %1 = vector.shape_cast %0 : vector<1x10x16xf32> to vector<10x16xf32>
    %c0_2 = arith.constant 0 : index
    %c0_3 = arith.constant 0 : index
    %2 = vector.load %arg1[%c0_2, %c0_3] : memref<16x64xf32, #tpu.memory_space<vmem>>, vector<16x64xf32>
    %cst = arith.constant dense<0.000000e+00> : vector<10x64xf32>
    %3 = tpu.matmul %1, %2, %cst {dimension_numbers = #tpu.dot_dimension_numbers<[1], [0], [0], [1], [0, 0, 1, 1], [], []>} : vector<10x16xf32>, vector<16x64xf32>, vector<10x64xf32> -> vector<10x64xf32>
    %c0_4 = arith.constant 0 : index
    %c0_5 = arith.constant 0 : index
    %4 = vector.load %arg2[%c0_4, %c0_5] : memref<1x64xf32, #tpu.memory_space<vmem>>, vector<1x64xf32>
    %5 = vector.broadcast %4 : vector<1x64xf32> to vector<10x64xf32>
    %6 = arith.addf %3, %5 : vector<10x64xf32>
    %c0_6 = arith.constant 0 : index
    %c0_7 = arith.constant 0 : index
    %7 = vector.load %arg3[%c0_6, %c0_7] : memref<64x4xf32, #tpu.memory_space<vmem>>, vector<64x4xf32>
    %cst_8 = arith.constant dense<0.000000e+00> : vector<10x4xf32>
    %8 = tpu.matmul %6, %7, %cst_8 {dimension_numbers = #tpu.dot_dimension_numbers<[1], [0], [0], [1], [0, 0, 1, 1], [], []>} : vector<10x64xf32>, vector<64x4xf32>, vector<10x4xf32> -> vector<10x4xf32>
    %c0_9 = arith.constant 0 : index
    %c0_10 = arith.constant 0 : index
    %9 = vector.load %arg4[%c0_9, %c0_10] : memref<4x64xf32, #tpu.memory_space<vmem>>, vector<4x64xf32>
    %cst_11 = arith.constant dense<0.000000e+00> : vector<4x10xf32>
    %10 = tpu.matmul %9, %6, %cst_11 {dimension_numbers = #tpu.dot_dimension_numbers<[1], [1], [0], [0], [0, 0, 1, 0], [], []>} : vector<4x64xf32>, vector<10x64xf32>, vector<4x10xf32> -> vector<4x10xf32>
    %11 = vector.extract_strided_slice %8 {offsets = [0, 0], sizes = [10, 1], strides = [1, 1]} : vector<10x4xf32> to vector<10x1xf32>
    %12 = vector.extract_strided_slice %10 {offsets = [0, 0], sizes = [1, 10], strides = [1, 1]} : vector<4x10xf32> to vector<1x10xf32>
    %13 = vector.broadcast %11 : vector<10x1xf32> to vector<10x10xf32>
    %14 = vector.broadcast %12 : vector<1x10xf32> to vector<10x10xf32>
    %15 = arith.addf %13, %14 : vector<10x10xf32>
    %c0_12 = arith.constant 0 : index
    %16 = memref.load %arg5[%c0_12] : memref<4xf32, #tpu.memory_space<smem>>
    %17 = vector.broadcast %16 : f32 to vector<10x10xf32>
    %18 = arith.addf %15, %17 : vector<10x10xf32>
    %19 = math.tanh %18 : vector<10x10xf32>
    %20 = math.exp %19 : vector<10x10xf32>
    %cst_13 = arith.constant dense<0.000000e+00> : vector<10xf32>
    %21 = vector.multi_reduction <add>, %20, %cst_13 [1] : vector<10x10xf32> to vector<10xf32>
    %22 = vector.shape_cast %21 : vector<10xf32> to vector<10x1xf32>
    %23 = vector.broadcast %22 : vector<10x1xf32> to vector<10x10xf32>
    %24 = arith.divf %20, %23 : vector<10x10xf32>
    %25 = vector.extract_strided_slice %6 {offsets = [0, 0], sizes = [10, 16], strides = [1, 1]} : vector<10x64xf32> to vector<10x16xf32>
    %cst_14 = arith.constant dense<0.000000e+00> : vector<10x16xf32>
    %26 = tpu.matmul %24, %25, %cst_14 {dimension_numbers = #tpu.dot_dimension_numbers<[1], [0], [0], [1], [0, 0, 1, 1], [], []>} : vector<10x10xf32>, vector<10x16xf32>, vector<10x16xf32> -> vector<10x16xf32>
    %c0_15 = arith.constant 0 : index
    %c0_16 = arith.constant 0 : index
    %c0_17 = arith.constant 0 : index
    %27 = vector.load %arg6[%c0_15, %c0_16, %c0_17] : memref<1x10x64xf32, #tpu.memory_space<vmem>>, vector<1x10x16xf32>
    %28 = vector.shape_cast %27 : vector<1x10x16xf32> to vector<10x16xf32>
    %29 = vector.shape_cast %26 : vector<10x16xf32> to vector<1x10x16xf32>
    tpu.vector_store %arg6[%c0_15, %c0_16, %c0_17], %29 {strides = array<i32>} : memref<1x10x64xf32, #tpu.memory_space<vmem>>, vector<1x10x16xf32>,
    %30 = vector.extract_strided_slice %8 {offsets = [0, 1], sizes = [10, 1], strides = [1, 1]} : vector<10x4xf32> to vector<10x1xf32>
    %31 = vector.extract_strided_slice %10 {offsets = [1, 0], sizes = [1, 10], strides = [1, 1]} : vector<4x10xf32> to vector<1x10xf32>
    %32 = vector.broadcast %30 : vector<10x1xf32> to vector<10x10xf32>
    %33 = vector.broadcast %31 : vector<1x10xf32> to vector<10x10xf32>
    %34 = arith.addf %32, %33 : vector<10x10xf32>
    %c1 = arith.constant 1 : index
    %35 = memref.load %arg5[%c1] : memref<4xf32, #tpu.memory_space<smem>>
    %36 = vector.broadcast %35 : f32 to vector<10x10xf32>
    %37 = arith.addf %34, %36 : vector<10x10xf32>
    %38 = math.tanh %37 : vector<10x10xf32>
    %39 = math.exp %38 : vector<10x10xf32>
    %cst_18 = arith.constant dense<0.000000e+00> : vector<10xf32>
    %40 = vector.multi_reduction <add>, %39, %cst_18 [1] : vector<10x10xf32> to vector<10xf32>
    %41 = vector.shape_cast %40 : vector<10xf32> to vector<10x1xf32>
    %42 = vector.broadcast %41 : vector<10x1xf32> to vector<10x10xf32>
    %43 = arith.divf %39, %42 : vector<10x10xf32>
    %44 = vector.extract_strided_slice %6 {offsets = [0, 16], sizes = [10, 16], strides = [1, 1]} : vector<10x64xf32> to vector<10x16xf32>
    %cst_19 = arith.constant dense<0.000000e+00> : vector<10x16xf32>
    %45 = tpu.matmul %43, %44, %cst_19 {dimension_numbers = #tpu.dot_dimension_numbers<[1], [0], [0], [1], [0, 0, 1, 1], [], []>} : vector<10x10xf32>, vector<10x16xf32>, vector<10x16xf32> -> vector<10x16xf32>
    %c0_20 = arith.constant 0 : index
    %c0_21 = arith.constant 0 : index
    %c16 = arith.constant 16 : index
    %46 = vector.load %arg6[%c0_20, %c0_21, %c16] : memref<1x10x64xf32, #tpu.memory_space<vmem>>, vector<1x10x16xf32>
    %47 = vector.shape_cast %46 : vector<1x10x16xf32> to vector<10x16xf32>
    %48 = vector.shape_cast %45 : vector<10x16xf32> to vector<1x10x16xf32>
    tpu.vector_store %arg6[%c0_20, %c0_21, %c16], %48 {strides = array<i32>} : memref<1x10x64xf32, #tpu.memory_space<vmem>>, vector<1x10x16xf32>,
    %49 = vector.extract_strided_slice %8 {offsets = [0, 2], sizes = [10, 1], strides = [1, 1]} : vector<10x4xf32> to vector<10x1xf32>
    %50 = vector.extract_strided_slice %10 {offsets = [2, 0], sizes = [1, 10], strides = [1, 1]} : vector<4x10xf32> to vector<1x10xf32>
    %51 = vector.broadcast %49 : vector<10x1xf32> to vector<10x10xf32>
    %52 = vector.broadcast %50 : vector<1x10xf32> to vector<10x10xf32>
    %53 = arith.addf %51, %52 : vector<10x10xf32>
    %c2 = arith.constant 2 : index
    %54 = memref.load %arg5[%c2] : memref<4xf32, #tpu.memory_space<smem>>
    %55 = vector.broadcast %54 : f32 to vector<10x10xf32>
    %56 = arith.addf %53, %55 : vector<10x10xf32>
    %57 = math.tanh %56 : vector<10x10xf32>
    %58 = math.exp %57 : vector<10x10xf32>
    %cst_22 = arith.constant dense<0.000000e+00> : vector<10xf32>
    %59 = vector.multi_reduction <add>, %58, %cst_22 [1] : vector<10x10xf32> to vector<10xf32>
    %60 = vector.shape_cast %59 : vector<10xf32> to vector<10x1xf32>
    %61 = vector.broadcast %60 : vector<10x1xf32> to vector<10x10xf32>
    %62 = arith.divf %58, %61 : vector<10x10xf32>
    %63 = vector.extract_strided_slice %6 {offsets = [0, 32], sizes = [10, 16], strides = [1, 1]} : vector<10x64xf32> to vector<10x16xf32>
    %cst_23 = arith.constant dense<0.000000e+00> : vector<10x16xf32>
    %64 = tpu.matmul %62, %63, %cst_23 {dimension_numbers = #tpu.dot_dimension_numbers<[1], [0], [0], [1], [0, 0, 1, 1], [], []>} : vector<10x10xf32>, vector<10x16xf32>, vector<10x16xf32> -> vector<10x16xf32>
    %c0_24 = arith.constant 0 : index
    %c0_25 = arith.constant 0 : index
    %c32 = arith.constant 32 : index
    %65 = vector.load %arg6[%c0_24, %c0_25, %c32] : memref<1x10x64xf32, #tpu.memory_space<vmem>>, vector<1x10x16xf32>
    %66 = vector.shape_cast %65 : vector<1x10x16xf32> to vector<10x16xf32>
    %67 = vector.shape_cast %64 : vector<10x16xf32> to vector<1x10x16xf32>
    tpu.vector_store %arg6[%c0_24, %c0_25, %c32], %67 {strides = array<i32>} : memref<1x10x64xf32, #tpu.memory_space<vmem>>, vector<1x10x16xf32>,
    %68 = vector.extract_strided_slice %8 {offsets = [0, 3], sizes = [10, 1], strides = [1, 1]} : vector<10x4xf32> to vector<10x1xf32>
    %69 = vector.extract_strided_slice %10 {offsets = [3, 0], sizes = [1, 10], strides = [1, 1]} : vector<4x10xf32> to vector<1x10xf32>
    %70 = vector.broadcast %68 : vector<10x1xf32> to vector<10x10xf32>
    %71 = vector.broadcast %69 : vector<1x10xf32> to vector<10x10xf32>
    %72 = arith.addf %70, %71 : vector<10x10xf32>
    %c3 = arith.constant 3 : index
    %73 = memref.load %arg5[%c3] : memref<4xf32, #tpu.memory_space<smem>>
    %74 = vector.broadcast %73 : f32 to vector<10x10xf32>
    %75 = arith.addf %72, %74 : vector<10x10xf32>
    %76 = math.tanh %75 : vector<10x10xf32>
    %77 = math.exp %76 : vector<10x10xf32>
    %cst_26 = arith.constant dense<0.000000e+00> : vector<10xf32>
    %78 = vector.multi_reduction <add>, %77, %cst_26 [1] : vector<10x10xf32> to vector<10xf32>
    %79 = vector.shape_cast %78 : vector<10xf32> to vector<10x1xf32>
    %80 = vector.broadcast %79 : vector<10x1xf32> to vector<10x10xf32>
    %81 = arith.divf %77, %80 : vector<10x10xf32>
    %82 = vector.extract_strided_slice %6 {offsets = [0, 48], sizes = [10, 16], strides = [1, 1]} : vector<10x64xf32> to vector<10x16xf32>
    %cst_27 = arith.constant dense<0.000000e+00> : vector<10x16xf32>
    %83 = tpu.matmul %81, %82, %cst_27 {dimension_numbers = #tpu.dot_dimension_numbers<[1], [0], [0], [1], [0, 0, 1, 1], [], []>} : vector<10x10xf32>, vector<10x16xf32>, vector<10x16xf32> -> vector<10x16xf32>
    %c0_28 = arith.constant 0 : index
    %c0_29 = arith.constant 0 : index
    %c48 = arith.constant 48 : index
    %84 = vector.load %arg6[%c0_28, %c0_29, %c48] : memref<1x10x64xf32, #tpu.memory_space<vmem>>, vector<1x10x16xf32>
    %85 = vector.shape_cast %84 : vector<1x10x16xf32> to vector<10x16xf32>
    %86 = vector.shape_cast %83 : vector<10x16xf32> to vector<1x10x16xf32>
    tpu.vector_store %arg6[%c0_28, %c0_29, %c48], %86 {strides = array<i32>} : memref<1x10x64xf32, #tpu.memory_space<vmem>>, vector<1x10x16xf32>,
    return
  }
}

</mosaic_0001>

<bundles_post_ra>
// kernel: tpu_custom_call.1
= control target key start
LH: loop header
LB: loop body
LE: loop exit
PB: predicated region body
PF: predicated region fallthrough
CT: control target
= control target key end

     0   :  { %11 = vsyncpa [#allocation3], 0  ;;  %s1188_s0 = inlined_call_operand.vmem [shape: f32[1,10,16], index: 0, kind: input, shape index: {}]   ;;  %s1189_s1 = inlined_call_operand.vmem [shape: f32[16,64], index: 1, kind: input, shape index: {}]   ;;  %s1190_s2 = inlined_call_operand.vmem [shape: f32[1,64], index: 2, kind: input, shape index: {}]   ;;  %s1191_s3 = inlined_call_operand.vmem [shape: f32[64,4], index: 3, kind: input, shape index: {}]   ;;  %s1192_s4 = inlined_call_operand.vmem [shape: f32[4,64], index: 4, kind: input, shape index: {}]   ;;  %s1193_s5 = inlined_call_operand.vmem [shape: f32[4], index: 5, kind: input, shape index: {}]   ;;  %s1194_s6 = inlined_call_operand.vmem [shape: f32[1,10,64], index: 6, kind: output, shape index: {}]  }
   0x1   :  { %s28_s23 = sshll.u32 %s1193_s5, 4  ;;  %s29_s23 = int_to_ptr.vmem [resolvable:$true] %s28_s23 }
   0x2   :  { %s1010_s24 = scalar_lea.vmem %s29_s23, 16  ;;  %p1015_p1 = scmp.lt.s32.totalorder %s29_s23, %s29_s23 }
   0x3   :  { %p1011_p0 = scmp.ne.s32.totalorder %s29_s23, %s1010_s24  ;;  %p1016_p2 = scmp.lt.s32.totalorder %s1010_s24, %s1010_s24 }
   0x5   :  { %p1017_p3 = por %p1016_p2, %p1015_p1 }
   0x7   :  { %p1018_p4 = pnand %p1017_p3, %p1011_p0 }
   0x9   :  { %1021 = shalt.err (!%p1018_p4)
}
   0xa   :  { %s1024_s25 = smov [#allocation2]  }
   0xb   :  { %31 = dma.vmem_to_smem %s29_s23, 16, %s1024_s25, [#allocation3]  }
   0xc   :  { %1022 = dma.done.wait [#allocation3], 16  }
   0xd   :  { %1023 = vsyncadd [#allocation3], 4294967280 }
   0xe   :  { %35 = sfence }
   0xf   :  { %v39_v0 = vld [vmem:[%s1189_s1 + $0x8] sm:$0xff]  ;;  %v38_v1 = vld [vmem:[%s1189_s1] sm:$0xff]  ;;  %vm47_vm0 = vcmask 130048   ;;  %v136_v3 = vld [vmem:[%s1191_s3 + $0x38] sm:$0xff]  ;;  %v1025_v11 = vmov 0.0   ;;  %vm1026_vm1 = vmmov 0   ;;  %v303_v27 = vlaneseq }
  0x10   :  { %v36_v2 = vld [vmem:[%s1188_s0] sm:$0xff]  ;;  %881 = vmatprep.subr.mxu0 %v39_v0  ;;  %v135_v4 = vld [vmem:[%s1191_s3 + $0x30] sm:$0xff]  ;;  %v37_v5 = vld [vmem:[%s1188_s0 + $0x8] sm:$0x3]  ;;  %888 = vmatprep.subr.mxu1 %v136_v3  ;;  %v1027_v13 = vmov 1   ;;  %v1028_v14 = vmov 0  }
  0x11   :  { %885 = vmatprep.mubr.msk.f32.mxu0 %vm47_vm0, %v36_v2  ;;  %882 = vmatpush3.msra.mxu0 %v39_v0  ;;  %v134_v6 = vld [vmem:[%s1191_s3 + $0x28] sm:$0xff]  ;;  %v133_v7 = vld [vmem:[%s1191_s3 + $0x20] sm:$0xff]  ;;  %v132_v8 = vld [vmem:[%s1191_s3 + $0x18] sm:$0xff]  ;;  %vm137_vm2 = vcmask 523264   ;;  %vm337_vm3 = vcmask 1041408   ;;  %v1029_v24 = vmov 2  }
  0x12   :  { %883 = vmatprep.subr.mxu0 %v38_v1  ;;  %889 = vmatpush3.msra.mxu1 %v136_v3  ;;  %v131_v9 = vld [vmem:[%s1191_s3 + $0x10] sm:$0xff]  ;;  %v130_v10 = vld [vmem:[%s1191_s3 + $0x8] sm:$0xff]  ;;  %v129_v12 = vld [vmem:[%s1191_s3] sm:$0xff]  ;;  %v1030_v26 = vmov 3   ;;  %s1033_s26 = smov 80   ;;  %v304_v28 = vshrl.u32 %v303_v27, 7 }
  0x13   :  { %884 = vmatpush3.msra.mxu0 %v38_v1  ;;  %890 = vmatprep.subr.mxu1 %v135_v4  ;;  %v825_v15 = vld [vmem:[%s1190_s2] ss:$0 sm:$0xff]  ;;  %s1031_s2 = smov 112   ;;  %s1130_s27 = sld [smem:[#allocation2 + $0x1]]  ;;  %vm323_vm4 = vcmask 74752   ;;  %vm319_vm5 = vcmask 80896  }
  0x14   :  { %886 = vmatmul.mubr.msk.f32.vlgmr.msra.gmra.mxu0 %vm47_vm0, %v37_v5  ;;  %891 = vmatpush3.msra.mxu1 %v135_v4  ;;  %v219_v20 = vld [vmem:[%s1192_s4] sm:$0xf]  ;;  %s1032_s4 = smov 96   ;;  %s309_s28 = sld [smem:[#allocation2]]  ;;  %v428_v29 = vsub.s32 1, %v304_v28  ;;  %v305_v30 = vsub.s32 0, %v304_v28 }
  0x15   :  { %892 = vmatprep.subr.mxu1 %v134_v6  ;;  %907 = vmatprep.subr.mxu0 %v1025_v11  ;;  %s840_s29 = sld [smem:[#allocation2 + $0x2]]  ;;  %v562_v33 = vsub.s32 2, %v304_v28  ;;  %v696_v51 = vsub.s32 3, %v304_v28  ;;  %vm416_vm6 = vcmask 123904   ;;  %s1034_s10 = smov 32   ;;  %vm550_vm7 = vcmask 255104  }
  0x16   :  { %893 = vmatpush3.msra.mxu1 %v134_v6  ;;  %911 = vmatprep.mubr.msk.f32.mxu0 %vm1026_vm1, %v1025_v11  ;;  %s844_s5 = sld [smem:[#allocation2 + $0x3]]  ;;  %s1035_s11 = smov 16   ;;  %vm684_vm8 = vcmask 386304   ;;  %vm548_vm9 = vcmask 261248   ;;  %vm682_vm10 = vcmask 392448   ;;  %vm818_vm11 = vcmask 517504  }
  0x17   :  { %894 = vmatprep.subr.mxu1 %v133_v7  ;;  %956 = vset.pattern.permute.xlu1 %v1027_v13  ;;  %s1036_s12 = smov 48   ;;  %vm816_vm12 = vcmask 523648  }
  0x18   :  { %895 = vmatpush3.msra.mxu1 %v133_v7  ;;  %955 = vset.pattern.permute.xlu0 %v1028_v14 }
  0x19   :  { %896 = vmatprep.subr.mxu1 %v132_v8  ;;  %v433_v34 = vstv %s1130_s27 }
  0x1a   :  { %897 = vmatpush3.msra.mxu1 %v132_v8  ;;  %v310_v36 = vstv %s309_s28 }
  0x1b   :  { %898 = vmatprep.subr.mxu1 %v131_v9  ;;  %v567_v45 = vstv %s840_s29 }
  0x1c   :  { %899 = vmatpush3.msra.mxu1 %v131_v9  ;;  %v701_v58 = vstv %s844_s5 }
  0x1d   :  { %900 = vmatprep.subr.mxu1 %v130_v10 }
  0x1e   :  { %901 = vmatpush3.msra.mxu1 %v130_v10 }
  0x1f   :  { %902 = vmatprep.subr.mxu1 %v129_v12 }
  0x20   :  { %903 = vmatpush3.msra.mxu1 %v129_v12 }
  0xd4   :  { %v887_v16 = vpop.f32.mrf.mxu0 }
  0xd5   :  { %v126_v17 = vadd.f32 %v887_v16, %v825_v15 }
  0xd6   :  { %v120_v18 = vpop.f32.mrf.mxu0 }
  0xd7   :  { %v1116_v19 = vadd.f32 %v825_v15, %v120_v18  ;;  %908 = vmatpush3.xpose.msk.msra.mxu0 %vm137_vm2, %v126_v17 }
  0xd8   :  { %909 = vmatprep.subr.mxu0 %v1025_v11 }
  0xd9   :  { %904 = vmatprep.mubr.msk.f32.mxu1 %vm137_vm2, %v1116_v19 }
  0xda   :  { %905 = vmatmul.mubr.msk.f32.vlgmr.msra.gmra.mxu1 %vm137_vm2, %v126_v17 }
  0xdb   :  { %910 = vmatpush3.xpose.msk.msra.mxu0 %vm137_vm2, %v1116_v19 }
  0xdc   :  { %914 = vmatprep.subr.msk.mxu0 %vm337_vm3, %v126_v17 }
  0xde   :  { %912 = vmatmul.mubr.msk.f32.vlgmr.msra.gmra.mxu0 %vm137_vm2, %v219_v20 }
  0xdf   :  { %915 = vmatpush3.msk.msra.mxu0 %vm337_vm3, %v126_v17 }
  0xe0   :  { %916 = vmatprep.subr.mxu0 %v1116_v19 }
  0xe1   :  { %917 = vmatpush3.msra.mxu0 %v1116_v19 }
 0x19a   :  { %v906_v21 = vpop.f32.mrf.mxu1 }
 0x19b   :  { %423 = vperm.xlu1 %956, %v906_v21   ;;  %300 = vperm.xlu0 %955, %v906_v21  }
 0x19c   :  { %v210_v22 = vpop.f32.mrf.mxu1 }
 0x19e   :  { %v289_v23 = vpop.f32.mrf.mxu0 }
 0x19f   :  { %957 = vset.pattern.permute.xlu1 %v1029_v24  ;;  %295 = vperm.xlu0 %955, %v210_v22   ;;  %v429_v31 = vrot.slane %v289_v23, %v428_v29  ;;  %v306_v32 = vrot.slane %v289_v23, %v305_v30  ;;  %v563_v40 = vrot.slane %v289_v23, %v562_v33 }
 0x1a0   :  { %557 = vperm.xlu1 %957, %v906_v21   ;;  %v913_v25 = vpop.f32.mrf.mxu0  ;;  %v697_v57 = vrot.slane %v289_v23, %v696_v51 }
 0x1a3   :  { %959 = vset.pattern.permute.xlu0 %v1029_v24 }
 0x1a4   :  { %958 = vset.pattern.permute.xlu1 %v1027_v13  ;;  %553 = vperm.xlu0 %959, %v210_v22  }
 0x1a5   :  { %419 = vperm.xlu1 %958, %v210_v22  }
 0x1a8   :  { %961 = vset.pattern.permute.xlu0 %v1030_v26 }
 0x1a9   :  { %960 = vset.pattern.permute.xlu1 %v1030_v26  ;;  %691 = vperm.xlu0 %961, %v906_v21  }
 0x1aa   :  { %687 = vperm.xlu1 %960, %v210_v22  }
 0x1ad   :  { %452 = vrot.lane.b32.xlu0 %v1116_v19, %s1031_s2 }
 0x1ae   :  { %454 = vrot.lane.b32.xlu1 %v126_v17, %s1031_s2 }
 0x1b2   :  { %588 = vrot.lane.b32.xlu1 %v126_v17, %s1032_s4 }
 0x1b6   :  { %722 = vrot.lane.b32.xlu1 %v126_v17, %s1033_s26 }
 0x216   :  { %v424_v35 = vpop.permute.xlu1 %423  ;;  %v301_v37 = vpop.permute.xlu0 %300 }
 0x217   :  { %v431_v38 = vadd.f32 %v429_v31, %v424_v35  ;;  %v308_v39 = vadd.f32 %v306_v32, %v301_v37 }
 0x219   :  { %v435_v41 = vadd.f32 %v433_v34, %v431_v38  ;;  %v312_v42 = vadd.f32 %v310_v36, %v308_v39 }
 0x21a   :  { %v296_v43 = vpop.permute.xlu0 %295 }
 0x21b   :  { %962 = vtanh.f32 %v435_v41  ;;  %v307_v44 = vadd.f32 %v306_v32, %v296_v43  ;;  %v558_v46 = vpop.permute.xlu1 %557 }
 0x21c   :  { %964 = vtanh.f32 %v312_v42  ;;  %v565_v47 = vadd.f32 %v563_v40, %v558_v46 }
 0x21d   :  { %v311_v48 = vadd.f32 %v310_v36, %v307_v44 }
 0x21e   :  { %v569_v49 = vadd.f32 %v567_v45, %v565_v47 }
 0x21f   :  { %966 = vtanh.f32 %v311_v48  ;;  %v554_v50 = vpop.permute.xlu0 %553 }
 0x220   :  { %968 = vtanh.f32 %v569_v49  ;;  %v564_v52 = vadd.f32 %v563_v40, %v554_v50  ;;  %v420_v53 = vpop.permute.xlu1 %419 }
 0x221   :  { %v430_v54 = vadd.f32 %v429_v31, %v420_v53 }
 0x222   :  { %v568_v55 = vadd.f32 %v567_v45, %v564_v52 }
 0x223   :  { %v434_v56 = vadd.f32 %v433_v34, %v430_v54 }
 0x224   :  { %970 = vtanh.f32 %v568_v55  ;;  %v692_v59 = vpop.permute.xlu0 %691 }
 0x225   :  { %972 = vtanh.f32 %v434_v56  ;;  %v699_v60 = vadd.f32 %v697_v57, %v692_v59  ;;  %v688_v61 = vpop.permute.xlu1 %687 }
 0x226   :  { %v698_v62 = vadd.f32 %v697_v57, %v688_v61 }
 0x227   :  { %v703_v63 = vadd.f32 %v701_v58, %v699_v60 }
 0x228   :  { %v963_v0 = vpop.eup %962  ;;  %v702_v1 = vadd.f32 %v701_v58, %v698_v62  ;;  %v453_v36 = vpop.permute.xlu0 %452 }
 0x229   :  { %v965_v2 = vpop.eup %964  ;;  %974 = vtanh.f32 %v703_v63  ;;  %v1133_v3 = vpop.permute.xlu1 %454  ;;  %v440_v4 = vmul.f32 1.442695, %v963_v0 }
 0x22a   :  { %v317_v5 = vmul.f32 1.442695, %v965_v2  ;;  %976 = vtanh.f32 %v702_v1  ;;  %921 = vmatprep.subr.msk.mxu0 %vm337_vm3, %v1133_v3 }
 0x22c   :  { %v967_v6 = vpop.eup %966  ;;  %978 = vpow2.f32 %v317_v5 }
 0x22d   :  { %v969_v7 = vpop.eup %968  ;;  %v315_v8 = vmul.f32 1.442695, %v967_v6  ;;  %v589_v9 = vpop.permute.xlu1 %588  ;;  %980 = vpow2.f32 %v440_v4 }
 0x22e   :  { %v574_v10 = vmul.f32 1.442695, %v969_v7  ;;  %928 = vmatprep.subr.msk.mxu1 %vm337_vm3, %v589_v9 }
 0x22f   :  { %982 = vpow2.f32 %v315_v8  ;;  %929 = vmatpush3.msk.msra.mxu1 %vm337_vm3, %v589_v9 }
 0x230   :  { %984 = vpow2.f32 %v574_v10 }
 0x231   :  { %v971_v11 = vpop.eup %970  ;;  %v723_v37 = vpop.permute.xlu1 %722 }
 0x232   :  { %v973_v12 = vpop.eup %972  ;;  %v572_v13 = vmul.f32 1.442695, %v971_v11 }
 0x233   :  { %v438_v14 = vmul.f32 1.442695, %v973_v12 }
 0x235   :  { %986 = vpow2.f32 %v438_v14 }
 0x236   :  { %v975_v15 = vpop.eup %974  ;;  %988 = vpow2.f32 %v572_v13 }
 0x237   :  { %v977_v16 = vpop.eup %976  ;;  %v708_v17 = vmul.f32 1.442695, %v975_v15 }
 0x238   :  { %v706_v18 = vmul.f32 1.442695, %v977_v16 }
 0x239   :  { %v979_v20 = vpop.eup %978  ;;  %990 = vpow2.f32 %v708_v17 }
 0x23a   :  { %v324_v21 = vsel %vm323_vm4, %v979_v20, 0.0  ;;  %v981_v22 = vpop.eup %980  ;;  %992 = vpow2.f32 %v706_v18 }
 0x23b   :  { %325 = vadd.xlane.f32.xlu0 %v324_v21  ;;  %v445_v25 = vsel %vm323_vm4, %v981_v22, 0.0 }
 0x23c   :  { %v983_v23 = vpop.eup %982 }
 0x23d   :  { %v320_v24 = vsel %vm319_vm5, %v983_v23, 0.0  ;;  %v985_v26 = vpop.eup %984 }
 0x23e   :  { %321 = vadd.xlane.f32.xlu1 %v320_v24  ;;  %v579_v28 = vsel %vm323_vm4, %v985_v26, 0.0 }
 0x23f   :  { %446 = vadd.xlane.f32.xlu0 %v445_v25 }
 0x242   :  { %v987_v27 = vpop.eup %986 }
 0x243   :  { %580 = vadd.xlane.f32.xlu0 %v579_v28  ;;  %v442_v29 = vsel %vm319_vm5, %v987_v27, 0.0  ;;  %v989_v30 = vpop.eup %988 }
 0x244   :  { %443 = vadd.xlane.f32.xlu1 %v442_v29  ;;  %v576_v32 = vsel %vm319_vm5, %v989_v30, 0.0 }
 0x246   :  { %v991_v31 = vpop.eup %990 }
 0x247   :  { %v713_v33 = vsel %vm323_vm4, %v991_v31, 0.0  ;;  %v993_v34 = vpop.eup %992 }
 0x248   :  { %577 = vadd.xlane.f32.xlu1 %v576_v32  ;;  %714 = vadd.xlane.f32.xlu0 %v713_v33  ;;  %v710_v35 = vsel %vm319_vm5, %v993_v34, 0.0 }
 0x24c   :  { %711 = vadd.xlane.f32.xlu1 %v710_v35 }
 0x25d   :  { %720 = vrot.lane.b32.xlu1 %v1116_v19, %s1033_s26 }
 0x25e   :  { %586 = vrot.lane.b32.xlu0 %v1116_v19, %s1032_s4 }
 0x2c4   :  { %v326_v38 = vpop.xlane.xlu0 %325 }
 0x2c5   :  { %994 = vrcp.f32 %v326_v38 }
 0x2c7   :  { %v322_v39 = vpop.xlane.xlu1 %321 }
 0x2c8   :  { %996 = vrcp.f32 %v322_v39  ;;  %v447_v40 = vpop.xlane.xlu0 %446 }
 0x2c9   :  { %998 = vrcp.f32 %v447_v40 }
 0x2cc   :  { %v581_v41 = vpop.xlane.xlu0 %580 }
 0x2cd   :  { %v444_v42 = vpop.xlane.xlu1 %443 }
 0x2ce   :  { %1000 = vrcp.f32 %v444_v42 }
 0x2cf   :  { %1002 = vrcp.f32 %v581_v41 }
 0x2d1   :  { %v578_v43 = vpop.xlane.xlu1 %577  ;;  %v715_v44 = vpop.xlane.xlu0 %714 }
 0x2d2   :  { %1004 = vrcp.f32 %v578_v43  ;;  %v995_v45 = vpop.eup %994 }
 0x2d3   :  { %1006 = vrcp.f32 %v715_v44  ;;  %v330_v49 = vmul.f32 %v995_v45, %v979_v20 }
 0x2d5   :  { %v997_v46 = vpop.eup %996  ;;  %v712_v47 = vpop.xlane.xlu1 %711 }
 0x2d6   :  { %v587_v19 = vpop.permute.xlu0 %586  ;;  %1008 = vrcp.f32 %v712_v47  ;;  %v328_v48 = vmul.f32 %v997_v46, %v983_v23  ;;  %v999_v50 = vpop.eup %998 }
 0x2d7   :  { %930 = vmatprep.subr.mxu1 %v587_v19  ;;  %v451_v53 = vmul.f32 %v999_v50, %v981_v22 }
 0x2d8   :  { %931 = vmatpush3.msra.mxu1 %v587_v19  ;;  %918 = vmatprep.mubr.msk.f32.mxu0 %vm319_vm5, %v328_v48 }
 0x2d9   :  { %919 = vmatmul.mubr.msk.f32.vlgmr.msra.gmra.mxu0 %vm319_vm5, %v330_v49  ;;  %v721_v56 = vpop.permute.xlu1 %720 }
 0x2da   :  { %922 = vmatpush3.msk.msra.mxu0 %vm337_vm3, %v1133_v3 }
 0x2db   :  { %v1001_v51 = vpop.eup %1000  ;;  %923 = vmatprep.subr.mxu0 %v453_v36 }
 0x2dc   :  { %924 = vmatpush3.msra.mxu0 %v453_v36  ;;  %v449_v52 = vmul.f32 %v1001_v51, %v987_v27  ;;  %v1003_v54 = vpop.eup %1002 }
 0x2dd   :  { %935 = vmatprep.subr.msk.mxu0 %vm337_vm3, %v723_v37  ;;  %v585_v58 = vmul.f32 %v1003_v54, %v985_v26 }
 0x2de   :  { %925 = vmatprep.mubr.msk.f32.mxu0 %vm319_vm5, %v449_v52 }
 0x2df   :  { %v1005_v55 = vpop.eup %1004  ;;  %926 = vmatmul.mubr.msk.f32.vlgmr.msra.gmra.mxu0 %vm319_vm5, %v451_v53 }
 0x2e0   :  { %936 = vmatpush3.msk.msra.mxu0 %vm337_vm3, %v723_v37  ;;  %v583_v57 = vmul.f32 %v1005_v55, %v989_v30  ;;  %v1007_v59 = vpop.eup %1006 }
 0x2e1   :  { %937 = vmatprep.subr.mxu0 %v721_v56  ;;  %v719_v62 = vmul.f32 %v1007_v59, %v991_v31 }
 0x2e2   :  { %938 = vmatpush3.msra.mxu0 %v721_v56  ;;  %932 = vmatprep.mubr.msk.f32.mxu1 %vm319_vm5, %v583_v57 }
 0x2e3   :  { %v1009_v60 = vpop.eup %1008  ;;  %933 = vmatmul.mubr.msk.f32.vlgmr.msra.gmra.mxu1 %vm319_vm5, %v585_v58 }
 0x2e4   :  { %v717_v61 = vmul.f32 %v1009_v60, %v993_v34 }
 0x2e6   :  { %939 = vmatprep.mubr.msk.f32.mxu0 %vm319_vm5, %v717_v61 }
 0x2e7   :  { %940 = vmatmul.mubr.msk.f32.vlgmr.msra.gmra.mxu0 %vm319_vm5, %v719_v62 }
 0x399   :  { %v920_v63 = vpop.f32.mrf.mxu0 }
 0x39a   :  { %417 = vst.msk [vmem:[%s1194_s6 + $0x8] sm:$0x3] %vm416_vm6, %v920_v63 }
 0x39b   :  { %v406_v0 = vpop.f32.mrf.mxu0 }
 0x39c   :  { %415 = vst.msk [vmem:[%s1194_s6] sm:$0xff] %vm47_vm0, %v406_v0 }
 0x39f   :  { %v927_v1 = vpop.f32.mrf.mxu0 }
 0x3a1   :  { %v531_v4 = vpop.f32.mrf.mxu0 }
 0x3a3   :  { %v934_v2 = vpop.f32.mrf.mxu1 }
 0x3a4   :  { %678 = vrot.lane.b32.xlu1 %v934_v2, %s1034_s10 }
 0x3a5   :  { %v665_v3 = vpop.f32.mrf.mxu1 }
 0x3a6   :  { %676 = vrot.lane.b32.xlu0 %v665_v3, %s1034_s10 }
 0x3a7   :  { %v941_v5 = vpop.f32.mrf.mxu0 }
 0x3a8   :  { %544 = vrot.lane.b32.xlu1 %v927_v1, %s1035_s11 }
 0x3a9   :  { %v799_v6 = vpop.f32.mrf.mxu0 }
 0x3aa   :  { %542 = vrot.lane.b32.xlu0 %v531_v4, %s1035_s11 }
 0x3ac   :  { %812 = vrot.lane.b32.xlu1 %v941_v5, %s1036_s12 }
 0x3ae   :  { %810 = vrot.lane.b32.xlu0 %v799_v6, %s1036_s12 }
 0x416   :  { %v679_v7 = vpop.permute.xlu1 %678 }
 0x418   :  { %v677_v8 = vpop.permute.xlu0 %676 }
 0x41a   :  { %v545_v9 = vpop.permute.xlu1 %544 }
 0x41b   :  { %551 = vst.msk [vmem:[%s1194_s6 + $0x8] sm:$0x3] %vm550_vm7, %v545_v9 }
 0x41c   :  { %v543_v10 = vpop.permute.xlu0 %542  ;;  %685 = vst.msk [vmem:[%s1194_s6 + $0x8] sm:$0x3] %vm684_vm8, %v679_v7 }
 0x41d   :  { %549 = vst.msk [vmem:[%s1194_s6] sm:$0xff] %vm548_vm9, %v543_v10 }
 0x41e   :  { %v813_v11 = vpop.permute.xlu1 %812  ;;  %683 = vst.msk [vmem:[%s1194_s6] sm:$0xff] %vm682_vm10, %v677_v8 }
 0x41f   :  { %819 = vst.msk [vmem:[%s1194_s6 + $0x8] sm:$0x3] %vm818_vm11, %v813_v11 }
 0x420   :  { %v811_v12 = vpop.permute.xlu0 %810 }
 0x421   :  { %817 = vst.msk [vmem:[%s1194_s6] sm:$0xff] %vm816_vm12, %v811_v12 }
 0x422   :  { %824 = vsyncpa [#allocation3], 1 }

</bundles_post_ra>
